<compile_context>
chip_gen: v5e
topology: v5e:2x2
jax: 0.10.0
libtpu: 0.0.40
codegen_flags: <defaults>
</compile_context>

<pallas_src>
import jax
import jax.numpy as jnp
from jax import lax
from jax.experimental import pallas as pl
from jax.experimental.pallas import tpu as pltpu

EPS = 1e-6  # nn.PairwiseDistance default eps: || x1 - x2 + eps ||_2


def _spline_eval_kernel(pts_ref, wv_ref, out_ref):
    """Per-tile spline evaluation.

    pts_ref : (2, N)      control points (x row, y row), SMEM (scalar reads)
    wv_ref  : (2, N+3)    solved spline weights (channel-major), SMEM (scalar reads)
    out_ref : (2, th, tw) output tile, channel-first, VMEM
    """
    _, th, tw = out_ref.shape
    n = pts_ref.shape[1]

    # Tile origin (scalar unit).
    y0 = (pl.program_id(0) * th).astype(jnp.float32)
    x0 = (pl.program_id(1) * tw).astype(jnp.float32)

    # In-tile coordinate grids.  Int iota + one cast is kept for robust Mosaic lowering;
    # the cast is 2 VPU ops per vreg per tile (negligible vs the per-point math).
    row = lax.broadcasted_iota(jnp.int32, (th, tw), 0).astype(jnp.float32)
    col = lax.broadcasted_iota(jnp.int32, (th, tw), 1).astype(jnp.float32)

    # Affine part with tile origin folded into scalar constants:
    #   wv[n] + wv[n+1]*(col+x0) + wv[n+2]*(row+y0)
    # = (wv[n] + wv[n+1]*x0 + wv[n+2]*y0) + wv[n+1]*col + wv[n+2]*row
    c0 = wv_ref[0, n] + wv_ref[0, n + 1] * x0 + wv_ref[0, n + 2] * y0
    c1 = wv_ref[1, n] + wv_ref[1, n + 1] * x0 + wv_ref[1, n + 2] * y0
    acc0 = c0 + wv_ref[0, n + 1] * col + wv_ref[0, n + 2] * row
    acc1 = c1 + wv_ref[1, n + 1] * col + wv_ref[1, n + 2] * row

    # Radial part.  EPS and the tile origin are folded into per-point scalars
    # (scalar unit), so the vector path is sub/sub/mul/mul/add + EUP sqrt + 2 mul-adds.
    def point_update(k, a0, a1):
        sx = pts_ref[0, k] - x0 - jnp.float32(EPS)   # dx = (col+x0) - px + EPS = col - sx
        sy = pts_ref[1, k] - y0 - jnp.float32(EPS)
        dx = col - sx
        dy = row - sy
        d = jnp.sqrt(dx * dx + dy * dy)
        return a0 + wv_ref[0, k] * d, a1 + wv_ref[1, k] * d

    if n <= 32:
        # Small, static N: fully unrolled (LLO scheduler sees everything).
        for k in range(n):
            acc0, acc1 = point_update(k, acc0, acc1)
    else:
        # Large N: bounded code size / vreg pressure with moderate unroll.
        def body(k, carry):
            a0, a1 = carry
            return point_update(k, a0, a1)
        acc0, acc1 = lax.fori_loop(0, n, body, (acc0, acc1), unroll=8)

    out_ref[0, :, :] = acc0
    out_ref[1, :, :] = acc1


def _pick_tiles(H_pad, W_pad, target_elems=256 * 1024, max_tile_elems=512 * 1024):
    """Choose (th, tw): lane-dense multiples of (8, 128), ~1-2 MiB per channel tile,
    and (when possible) an even grid-step count so the v7x megacore split balances."""
    # Lane (last) dim: largest multiple of 128 dividing W_pad, capped.
    tw = 128
    cand = 256
    while cand <= min(W_pad, 2048):
        if W_pad % cand == 0:
            tw = cand
        cand += 128

    # Sublane dim: largest multiple of 8 dividing H_pad with th*tw <= target_elems.
    max_rows = min(H_pad, max(8, min(target_elems // tw, max_tile_elems // tw)))
    th = 8
    cand = 16
    while cand <= max_rows:
        if H_pad % cand == 0:
            th = cand
        cand += 8

    # Prefer an even total step count (2 TensorCores on v7x share the grid).
    steps = (H_pad // th) * (W_pad // tw)
    if steps % 2 == 1:
        if th % 16 == 0:
            th //= 2
        elif tw % 256 == 0:
            tw //= 2
    return th, tw


def spline_interpolation(pts, vals, output_size):
    """JAX/Pallas equivalent of SplineInterpolation.forward(pts, vals)."""
    H, W = output_size
    pts = pts.astype(jnp.float32)
    vals = vals.astype(jnp.float32)
    n = pts.shape[0]

    # ---- build and solve the (N+3)x(N+3) spline system (plain-JAX glue) ----
    r = pts @ pts.T                                             # (N, N)
    diag = jnp.diag(r)
    D = diag[None, :] + diag[:, None] - 2.0 * r
    D = jnp.maximum(D, 0.0)                                     # guard sqrt of tiny negatives
    dists_nn = jnp.sqrt(D)                                      # similarity_matrix (no eps, as in torch)
    B = jnp.concatenate([jnp.ones((n, 1), jnp.float32), pts], axis=1)     # (N, 3)
    X = jnp.concatenate(
        [jnp.concatenate([dists_nn, B.T], axis=0),
         jnp.concatenate([B, jnp.zeros((3, 3), jnp.float32)], axis=0)],
        axis=1)                                                 # (N+3, N+3)
    Y = jnp.concatenate([vals, jnp.zeros((3, 2), jnp.float32)], axis=0)   # (N+3, 2)
    # TODO(synk): torch.gesv (dense LU solve) has no Pallas primitive; solved in plain-JAX glue.
    wv = jnp.linalg.solve(X, Y)                                 # (N+3, 2)

    # Channel-major / long-axis-last layouts for SMEM (avoid [R,C] SMEM padding blowup).
    pts_t = pts.T                                               # (2, N)
    wv_t = wv.T                                                 # (2, N+3)

    # Pad to (8, 128) multiples -> always lane-dense, unmasked stores; slice afterwards.
    H_pad = -(-H // 8) * 8
    W_pad = -(-W // 128) * 128
    th, tw = _pick_tiles(H_pad, W_pad)
    grid = (H_pad // th, W_pad // tw)

    out = pl.pallas_call(
        _spline_eval_kernel,
        out_shape=jax.ShapeDtypeStruct((2, H_pad, W_pad), jnp.float32),
        grid=grid,
        in_specs=[
            pl.BlockSpec(memory_space=pltpu.MemorySpace.SMEM),   # pts_t (2, N)
            pl.BlockSpec(memory_space=pltpu.MemorySpace.SMEM),   # wv_t  (2, N+3)
        ],
        out_specs=pl.BlockSpec((2, th, tw), lambda i, j: (0, i, j)),
        compiler_params=pltpu.CompilerParams(
            dimension_semantics=("parallel", "parallel"),
            vmem_limit_bytes=32 * 1024 * 1024),
    )(pts_t, wv_t)

    # Channel-first padded planes -> (H, W, 2), matching the PyTorch module's layout.
    return jnp.transpose(out[:, :H, :W], (1, 2, 0))


def _reference_eval(pts, vals, output_size):
    """Pure-JAX reference of the full forward pass (for sanity check)."""
    H, W = output_size
    pts = pts.astype(jnp.float32)
    vals = vals.astype(jnp.float32)
    n = pts.shape[0]
    r = pts @ pts.T
    diag = jnp.diag(r)
    D = jnp.maximum(diag[None, :] + diag[:, None] - 2.0 * r, 0.0)
    dists_nn = jnp.sqrt(D)
    B = jnp.concatenate([jnp.ones((n, 1), jnp.float32), pts], axis=1)
    X = jnp.concatenate(
        [jnp.concatenate([dists_nn, B.T], axis=0),
         jnp.concatenate([B, jnp.zeros((3, 3), jnp.float32)], axis=0)], axis=1)
    Y = jnp.concatenate([vals, jnp.zeros((3, 2), jnp.float32)], axis=0)
    wv = jnp.linalg.solve(X, Y)
    xs = jnp.arange(W, dtype=jnp.float32)
    ys = jnp.arange(H, dtype=jnp.float32)
    coord = jnp.stack([jnp.broadcast_to(xs[None, :], (H, W)),
                       jnp.broadcast_to(ys[:, None], (H, W))], axis=-1).reshape(-1, 2)
    diff = coord[:, None, :] - pts[None, :, :] + EPS
    dists = jnp.sqrt(jnp.sum(diff * diff, axis=-1))
    A = jnp.concatenate([dists, jnp.ones((coord.shape[0], 1), jnp.float32), coord], axis=1)
    return (A @ wv).reshape(H, W, 2)


if __name__ == "__main__":
    key = jax.random.PRNGKey(0)
    k1, k2 = jax.random.split(key)

    N = 8               # number of control points
    H, W = 16, 16       # output_size

    pts = jax.random.uniform(k1, (N, 2), dtype=jnp.float32, minval=0.0, maxval=15.0)
    vals = jax.random.normal(k2, (N, 2), dtype=jnp.float32)

    res = spline_interpolation(pts, vals, (H, W))
    res = jax.block_until_ready(res)
    assert res.shape == (H, W, 2)
    ref = _reference_eval(pts, vals, (H, W))
    assert jnp.allclose(res, ref, atol=1e-3, rtol=1e-3), \
        float(jnp.max(jnp.abs(res - ref)))

    # Second shape exercising the pad-and-slice path (H not %8, W not %128).
    H2, W2 = 20, 33
    res2 = jax.block_until_ready(spline_interpolation(pts, vals, (H2, W2)))
    ref2 = _reference_eval(pts, vals, (H2, W2))
    assert res2.shape == (H2, W2, 2)
    assert jnp.allclose(res2, ref2, atol=1e-3, rtol=1e-3), \
        float(jnp.max(jnp.abs(res2 - ref2)))

    print("KERNEL_OK")
</pallas_src>

<mosaic_0001>
module attributes {stable_mosaic.version = 11 : i64} {
  func.func @_spline_eval_kernel(%arg0: i32, %arg1: i32, %arg2: memref<2x8xf32, #tpu.memory_space<smem>>, %arg3: memref<2x11xf32, #tpu.memory_space<smem>>, %arg4: memref<2x8x128xf32, #tpu.memory_space<vmem>>) attributes {dimension_semantics = [#tpu.dimension_semantics<parallel>, #tpu.dimension_semantics<parallel>], iteration_bounds = array<i64: 2, 1>, scalar_prefetch = 0 : i64, scratch_operands = 0 : i64, tpu.core_type = #tpu.core_type<tc>, window_params = [{transform_indices = @transform_0, window_bounds = array<i64: 2, 8>}, {transform_indices = @transform_1, window_bounds = array<i64: 2, 11>}, {transform_indices = @transform_2, window_bounds = array<i64: 2, 8, 128>}]} {
    %c8_i32 = arith.constant 8 : i32
    %0 = arith.muli %arg0, %c8_i32 : i32
    %1 = arith.sitofp %0 : i32 to f32
    %c128_i32 = arith.constant 128 : i32
    %2 = arith.muli %arg1, %c128_i32 : i32
    %3 = arith.sitofp %2 : i32 to f32
    %4 = tpu.iota {dimensions = array<i32: 0>} : vector<8x128xi32>
    %5 = arith.sitofp %4 : vector<8x128xi32> to vector<8x128xf32>
    %6 = tpu.iota {dimensions = array<i32: 1>} : vector<8x128xi32>
    %7 = arith.sitofp %6 : vector<8x128xi32> to vector<8x128xf32>
    %c0 = arith.constant 0 : index
    %c8 = arith.constant 8 : index
    %8 = memref.load %arg3[%c0, %c8] : memref<2x11xf32, #tpu.memory_space<smem>>
    %c0_0 = arith.constant 0 : index
    %c9 = arith.constant 9 : index
    %9 = memref.load %arg3[%c0_0, %c9] : memref<2x11xf32, #tpu.memory_space<smem>>
    %10 = arith.mulf %9, %3 : f32
    %11 = arith.addf %8, %10 : f32
    %c0_1 = arith.constant 0 : index
    %c10 = arith.constant 10 : index
    %12 = memref.load %arg3[%c0_1, %c10] : memref<2x11xf32, #tpu.memory_space<smem>>
    %13 = arith.mulf %12, %1 : f32
    %14 = arith.addf %11, %13 : f32
    %c1 = arith.constant 1 : index
    %c8_2 = arith.constant 8 : index
    %15 = memref.load %arg3[%c1, %c8_2] : memref<2x11xf32, #tpu.memory_space<smem>>
    %c1_3 = arith.constant 1 : index
    %c9_4 = arith.constant 9 : index
    %16 = memref.load %arg3[%c1_3, %c9_4] : memref<2x11xf32, #tpu.memory_space<smem>>
    %17 = arith.mulf %16, %3 : f32
    %18 = arith.addf %15, %17 : f32
    %c1_5 = arith.constant 1 : index
    %c10_6 = arith.constant 10 : index
    %19 = memref.load %arg3[%c1_5, %c10_6] : memref<2x11xf32, #tpu.memory_space<smem>>
    %20 = arith.mulf %19, %1 : f32
    %21 = arith.addf %18, %20 : f32
    %c0_7 = arith.constant 0 : index
    %c9_8 = arith.constant 9 : index
    %22 = memref.load %arg3[%c0_7, %c9_8] : memref<2x11xf32, #tpu.memory_space<smem>>
    %23 = vector.broadcast %22 : f32 to vector<8x128xf32>
    %24 = arith.mulf %23, %7 : vector<8x128xf32>
    %25 = vector.broadcast %14 : f32 to vector<8x128xf32>
    %26 = arith.addf %25, %24 : vector<8x128xf32>
    %c0_9 = arith.constant 0 : index
    %c10_10 = arith.constant 10 : index
    %27 = memref.load %arg3[%c0_9, %c10_10] : memref<2x11xf32, #tpu.memory_space<smem>>
    %28 = vector.broadcast %27 : f32 to vector<8x128xf32>
    %29 = arith.mulf %28, %5 : vector<8x128xf32>
    %30 = arith.addf %26, %29 : vector<8x128xf32>
    %c1_11 = arith.constant 1 : index
    %c9_12 = arith.constant 9 : index
    %31 = memref.load %arg3[%c1_11, %c9_12] : memref<2x11xf32, #tpu.memory_space<smem>>
    %32 = vector.broadcast %31 : f32 to vector<8x128xf32>
    %33 = arith.mulf %32, %7 : vector<8x128xf32>
    %34 = vector.broadcast %21 : f32 to vector<8x128xf32>
    %35 = arith.addf %34, %33 : vector<8x128xf32>
    %c1_13 = arith.constant 1 : index
    %c10_14 = arith.constant 10 : index
    %36 = memref.load %arg3[%c1_13, %c10_14] : memref<2x11xf32, #tpu.memory_space<smem>>
    %37 = vector.broadcast %36 : f32 to vector<8x128xf32>
    %38 = arith.mulf %37, %5 : vector<8x128xf32>
    %39 = arith.addf %35, %38 : vector<8x128xf32>
    %c0_15 = arith.constant 0 : index
    %c0_16 = arith.constant 0 : index
    %40 = memref.load %arg2[%c0_15, %c0_16] : memref<2x8xf32, #tpu.memory_space<smem>>
    %41 = arith.subf %40, %3 : f32
    %cst = arith.constant 9.99999997E-7 : f32
    %42 = arith.subf %41, %cst : f32
    %c1_17 = arith.constant 1 : index
    %c0_18 = arith.constant 0 : index
    %43 = memref.load %arg2[%c1_17, %c0_18] : memref<2x8xf32, #tpu.memory_space<smem>>
    %44 = arith.subf %43, %1 : f32
    %cst_19 = arith.constant 9.99999997E-7 : f32
    %45 = arith.subf %44, %cst_19 : f32
    %46 = vector.broadcast %42 : f32 to vector<8x128xf32>
    %47 = arith.subf %7, %46 : vector<8x128xf32>
    %48 = vector.broadcast %45 : f32 to vector<8x128xf32>
    %49 = arith.subf %5, %48 : vector<8x128xf32>
    %50 = arith.mulf %47, %47 : vector<8x128xf32>
    %51 = arith.mulf %49, %49 : vector<8x128xf32>
    %52 = arith.addf %50, %51 : vector<8x128xf32>
    %53 = math.sqrt %52 : vector<8x128xf32>
    %c0_20 = arith.constant 0 : index
    %c0_21 = arith.constant 0 : index
    %54 = memref.load %arg3[%c0_20, %c0_21] : memref<2x11xf32, #tpu.memory_space<smem>>
    %55 = vector.broadcast %54 : f32 to vector<8x128xf32>
    %56 = arith.mulf %55, %53 : vector<8x128xf32>
    %57 = arith.addf %30, %56 : vector<8x128xf32>
    %c1_22 = arith.constant 1 : index
    %c0_23 = arith.constant 0 : index
    %58 = memref.load %arg3[%c1_22, %c0_23] : memref<2x11xf32, #tpu.memory_space<smem>>
    %59 = vector.broadcast %58 : f32 to vector<8x128xf32>
    %60 = arith.mulf %59, %53 : vector<8x128xf32>
    %61 = arith.addf %39, %60 : vector<8x128xf32>
    %c0_24 = arith.constant 0 : index
    %c1_25 = arith.constant 1 : index
    %62 = memref.load %arg2[%c0_24, %c1_25] : memref<2x8xf32, #tpu.memory_space<smem>>
    %63 = arith.subf %62, %3 : f32
    %cst_26 = arith.constant 9.99999997E-7 : f32
    %64 = arith.subf %63, %cst_26 : f32
    %c1_27 = arith.constant 1 : index
    %c1_28 = arith.constant 1 : index
    %65 = memref.load %arg2[%c1_27, %c1_28] : memref<2x8xf32, #tpu.memory_space<smem>>
    %66 = arith.subf %65, %1 : f32
    %cst_29 = arith.constant 9.99999997E-7 : f32
    %67 = arith.subf %66, %cst_29 : f32
    %68 = vector.broadcast %64 : f32 to vector<8x128xf32>
    %69 = arith.subf %7, %68 : vector<8x128xf32>
    %70 = vector.broadcast %67 : f32 to vector<8x128xf32>
    %71 = arith.subf %5, %70 : vector<8x128xf32>
    %72 = arith.mulf %69, %69 : vector<8x128xf32>
    %73 = arith.mulf %71, %71 : vector<8x128xf32>
    %74 = arith.addf %72, %73 : vector<8x128xf32>
    %75 = math.sqrt %74 : vector<8x128xf32>
    %c0_30 = arith.constant 0 : index
    %c1_31 = arith.constant 1 : index
    %76 = memref.load %arg3[%c0_30, %c1_31] : memref<2x11xf32, #tpu.memory_space<smem>>
    %77 = vector.broadcast %76 : f32 to vector<8x128xf32>
    %78 = arith.mulf %77, %75 : vector<8x128xf32>
    %79 = arith.addf %57, %78 : vector<8x128xf32>
    %c1_32 = arith.constant 1 : index
    %c1_33 = arith.constant 1 : index
    %80 = memref.load %arg3[%c1_32, %c1_33] : memref<2x11xf32, #tpu.memory_space<smem>>
    %81 = vector.broadcast %80 : f32 to vector<8x128xf32>
    %82 = arith.mulf %81, %75 : vector<8x128xf32>
    %83 = arith.addf %61, %82 : vector<8x128xf32>
    %c0_34 = arith.constant 0 : index
    %c2 = arith.constant 2 : index
    %84 = memref.load %arg2[%c0_34, %c2] : memref<2x8xf32, #tpu.memory_space<smem>>
    %85 = arith.subf %84, %3 : f32
    %cst_35 = arith.constant 9.99999997E-7 : f32
    %86 = arith.subf %85, %cst_35 : f32
    %c1_36 = arith.constant 1 : index
    %c2_37 = arith.constant 2 : index
    %87 = memref.load %arg2[%c1_36, %c2_37] : memref<2x8xf32, #tpu.memory_space<smem>>
    %88 = arith.subf %87, %1 : f32
    %cst_38 = arith.constant 9.99999997E-7 : f32
    %89 = arith.subf %88, %cst_38 : f32
    %90 = vector.broadcast %86 : f32 to vector<8x128xf32>
    %91 = arith.subf %7, %90 : vector<8x128xf32>
    %92 = vector.broadcast %89 : f32 to vector<8x128xf32>
    %93 = arith.subf %5, %92 : vector<8x128xf32>
    %94 = arith.mulf %91, %91 : vector<8x128xf32>
    %95 = arith.mulf %93, %93 : vector<8x128xf32>
    %96 = arith.addf %94, %95 : vector<8x128xf32>
    %97 = math.sqrt %96 : vector<8x128xf32>
    %c0_39 = arith.constant 0 : index
    %c2_40 = arith.constant 2 : index
    %98 = memref.load %arg3[%c0_39, %c2_40] : memref<2x11xf32, #tpu.memory_space<smem>>
    %99 = vector.broadcast %98 : f32 to vector<8x128xf32>
    %100 = arith.mulf %99, %97 : vector<8x128xf32>
    %101 = arith.addf %79, %100 : vector<8x128xf32>
    %c1_41 = arith.constant 1 : index
    %c2_42 = arith.constant 2 : index
    %102 = memref.load %arg3[%c1_41, %c2_42] : memref<2x11xf32, #tpu.memory_space<smem>>
    %103 = vector.broadcast %102 : f32 to vector<8x128xf32>
    %104 = arith.mulf %103, %97 : vector<8x128xf32>
    %105 = arith.addf %83, %104 : vector<8x128xf32>
    %c0_43 = arith.constant 0 : index
    %c3 = arith.constant 3 : index
    %106 = memref.load %arg2[%c0_43, %c3] : memref<2x8xf32, #tpu.memory_space<smem>>
    %107 = arith.subf %106, %3 : f32
    %cst_44 = arith.constant 9.99999997E-7 : f32
    %108 = arith.subf %107, %cst_44 : f32
    %c1_45 = arith.constant 1 : index
    %c3_46 = arith.constant 3 : index
    %109 = memref.load %arg2[%c1_45, %c3_46] : memref<2x8xf32, #tpu.memory_space<smem>>
    %110 = arith.subf %109, %1 : f32
    %cst_47 = arith.constant 9.99999997E-7 : f32
    %111 = arith.subf %110, %cst_47 : f32
    %112 = vector.broadcast %108 : f32 to vector<8x128xf32>
    %113 = arith.subf %7, %112 : vector<8x128xf32>
    %114 = vector.broadcast %111 : f32 to vector<8x128xf32>
    %115 = arith.subf %5, %114 : vector<8x128xf32>
    %116 = arith.mulf %113, %113 : vector<8x128xf32>
    %117 = arith.mulf %115, %115 : vector<8x128xf32>
    %118 = arith.addf %116, %117 : vector<8x128xf32>
    %119 = math.sqrt %118 : vector<8x128xf32>
    %c0_48 = arith.constant 0 : index
    %c3_49 = arith.constant 3 : index
    %120 = memref.load %arg3[%c0_48, %c3_49] : memref<2x11xf32, #tpu.memory_space<smem>>
    %121 = vector.broadcast %120 : f32 to vector<8x128xf32>
    %122 = arith.mulf %121, %119 : vector<8x128xf32>
    %123 = arith.addf %101, %122 : vector<8x128xf32>
    %c1_50 = arith.constant 1 : index
    %c3_51 = arith.constant 3 : index
    %124 = memref.load %arg3[%c1_50, %c3_51] : memref<2x11xf32, #tpu.memory_space<smem>>
    %125 = vector.broadcast %124 : f32 to vector<8x128xf32>
    %126 = arith.mulf %125, %119 : vector<8x128xf32>
    %127 = arith.addf %105, %126 : vector<8x128xf32>
    %c0_52 = arith.constant 0 : index
    %c4 = arith.constant 4 : index
    %128 = memref.load %arg2[%c0_52, %c4] : memref<2x8xf32, #tpu.memory_space<smem>>
    %129 = arith.subf %128, %3 : f32
    %cst_53 = arith.constant 9.99999997E-7 : f32
    %130 = arith.subf %129, %cst_53 : f32
    %c1_54 = arith.constant 1 : index
    %c4_55 = arith.constant 4 : index
    %131 = memref.load %arg2[%c1_54, %c4_55] : memref<2x8xf32, #tpu.memory_space<smem>>
    %132 = arith.subf %131, %1 : f32
    %cst_56 = arith.constant 9.99999997E-7 : f32
    %133 = arith.subf %132, %cst_56 : f32
    %134 = vector.broadcast %130 : f32 to vector<8x128xf32>
    %135 = arith.subf %7, %134 : vector<8x128xf32>
    %136 = vector.broadcast %133 : f32 to vector<8x128xf32>
    %137 = arith.subf %5, %136 : vector<8x128xf32>
    %138 = arith.mulf %135, %135 : vector<8x128xf32>
    %139 = arith.mulf %137, %137 : vector<8x128xf32>
    %140 = arith.addf %138, %139 : vector<8x128xf32>
    %141 = math.sqrt %140 : vector<8x128xf32>
    %c0_57 = arith.constant 0 : index
    %c4_58 = arith.constant 4 : index
    %142 = memref.load %arg3[%c0_57, %c4_58] : memref<2x11xf32, #tpu.memory_space<smem>>
    %143 = vector.broadcast %142 : f32 to vector<8x128xf32>
    %144 = arith.mulf %143, %141 : vector<8x128xf32>
    %145 = arith.addf %123, %144 : vector<8x128xf32>
    %c1_59 = arith.constant 1 : index
    %c4_60 = arith.constant 4 : index
    %146 = memref.load %arg3[%c1_59, %c4_60] : memref<2x11xf32, #tpu.memory_space<smem>>
    %147 = vector.broadcast %146 : f32 to vector<8x128xf32>
    %148 = arith.mulf %147, %141 : vector<8x128xf32>
    %149 = arith.addf %127, %148 : vector<8x128xf32>
    %c0_61 = arith.constant 0 : index
    %c5 = arith.constant 5 : index
    %150 = memref.load %arg2[%c0_61, %c5] : memref<2x8xf32, #tpu.memory_space<smem>>
    %151 = arith.subf %150, %3 : f32
    %cst_62 = arith.constant 9.99999997E-7 : f32
    %152 = arith.subf %151, %cst_62 : f32
    %c1_63 = arith.constant 1 : index
    %c5_64 = arith.constant 5 : index
    %153 = memref.load %arg2[%c1_63, %c5_64] : memref<2x8xf32, #tpu.memory_space<smem>>
    %154 = arith.subf %153, %1 : f32
    %cst_65 = arith.constant 9.99999997E-7 : f32
    %155 = arith.subf %154, %cst_65 : f32
    %156 = vector.broadcast %152 : f32 to vector<8x128xf32>
    %157 = arith.subf %7, %156 : vector<8x128xf32>
    %158 = vector.broadcast %155 : f32 to vector<8x128xf32>
    %159 = arith.subf %5, %158 : vector<8x128xf32>
    %160 = arith.mulf %157, %157 : vector<8x128xf32>
    %161 = arith.mulf %159, %159 : vector<8x128xf32>
    %162 = arith.addf %160, %161 : vector<8x128xf32>
    %163 = math.sqrt %162 : vector<8x128xf32>
    %c0_66 = arith.constant 0 : index
    %c5_67 = arith.constant 5 : index
    %164 = memref.load %arg3[%c0_66, %c5_67] : memref<2x11xf32, #tpu.memory_space<smem>>
    %165 = vector.broadcast %164 : f32 to vector<8x128xf32>
    %166 = arith.mulf %165, %163 : vector<8x128xf32>
    %167 = arith.addf %145, %166 : vector<8x128xf32>
    %c1_68 = arith.constant 1 : index
    %c5_69 = arith.constant 5 : index
    %168 = memref.load %arg3[%c1_68, %c5_69] : memref<2x11xf32, #tpu.memory_space<smem>>
    %169 = vector.broadcast %168 : f32 to vector<8x128xf32>
    %170 = arith.mulf %169, %163 : vector<8x128xf32>
    %171 = arith.addf %149, %170 : vector<8x128xf32>
    %c0_70 = arith.constant 0 : index
    %c6 = arith.constant 6 : index
    %172 = memref.load %arg2[%c0_70, %c6] : memref<2x8xf32, #tpu.memory_space<smem>>
    %173 = arith.subf %172, %3 : f32
    %cst_71 = arith.constant 9.99999997E-7 : f32
    %174 = arith.subf %173, %cst_71 : f32
    %c1_72 = arith.constant 1 : index
    %c6_73 = arith.constant 6 : index
    %175 = memref.load %arg2[%c1_72, %c6_73] : memref<2x8xf32, #tpu.memory_space<smem>>
    %176 = arith.subf %175, %1 : f32
    %cst_74 = arith.constant 9.99999997E-7 : f32
    %177 = arith.subf %176, %cst_74 : f32
    %178 = vector.broadcast %174 : f32 to vector<8x128xf32>
    %179 = arith.subf %7, %178 : vector<8x128xf32>
    %180 = vector.broadcast %177 : f32 to vector<8x128xf32>
    %181 = arith.subf %5, %180 : vector<8x128xf32>
    %182 = arith.mulf %179, %179 : vector<8x128xf32>
    %183 = arith.mulf %181, %181 : vector<8x128xf32>
    %184 = arith.addf %182, %183 : vector<8x128xf32>
    %185 = math.sqrt %184 : vector<8x128xf32>
    %c0_75 = arith.constant 0 : index
    %c6_76 = arith.constant 6 : index
    %186 = memref.load %arg3[%c0_75, %c6_76] : memref<2x11xf32, #tpu.memory_space<smem>>
    %187 = vector.broadcast %186 : f32 to vector<8x128xf32>
    %188 = arith.mulf %187, %185 : vector<8x128xf32>
    %189 = arith.addf %167, %188 : vector<8x128xf32>
    %c1_77 = arith.constant 1 : index
    %c6_78 = arith.constant 6 : index
    %190 = memref.load %arg3[%c1_77, %c6_78] : memref<2x11xf32, #tpu.memory_space<smem>>
    %191 = vector.broadcast %190 : f32 to vector<8x128xf32>
    %192 = arith.mulf %191, %185 : vector<8x128xf32>
    %193 = arith.addf %171, %192 : vector<8x128xf32>
    %c0_79 = arith.constant 0 : index
    %c7 = arith.constant 7 : index
    %194 = memref.load %arg2[%c0_79, %c7] : memref<2x8xf32, #tpu.memory_space<smem>>
    %195 = arith.subf %194, %3 : f32
    %cst_80 = arith.constant 9.99999997E-7 : f32
    %196 = arith.subf %195, %cst_80 : f32
    %c1_81 = arith.constant 1 : index
    %c7_82 = arith.constant 7 : index
    %197 = memref.load %arg2[%c1_81, %c7_82] : memref<2x8xf32, #tpu.memory_space<smem>>
    %198 = arith.subf %197, %1 : f32
    %cst_83 = arith.constant 9.99999997E-7 : f32
    %199 = arith.subf %198, %cst_83 : f32
    %200 = vector.broadcast %196 : f32 to vector<8x128xf32>
    %201 = arith.subf %7, %200 : vector<8x128xf32>
    %202 = vector.broadcast %199 : f32 to vector<8x128xf32>
    %203 = arith.subf %5, %202 : vector<8x128xf32>
    %204 = arith.mulf %201, %201 : vector<8x128xf32>
    %205 = arith.mulf %203, %203 : vector<8x128xf32>
    %206 = arith.addf %204, %205 : vector<8x128xf32>
    %207 = math.sqrt %206 : vector<8x128xf32>
    %c0_84 = arith.constant 0 : index
    %c7_85 = arith.constant 7 : index
    %208 = memref.load %arg3[%c0_84, %c7_85] : memref<2x11xf32, #tpu.memory_space<smem>>
    %209 = vector.broadcast %208 : f32 to vector<8x128xf32>
    %210 = arith.mulf %209, %207 : vector<8x128xf32>
    %211 = arith.addf %189, %210 : vector<8x128xf32>
    %c1_86 = arith.constant 1 : index
    %c7_87 = arith.constant 7 : index
    %212 = memref.load %arg3[%c1_86, %c7_87] : memref<2x11xf32, #tpu.memory_space<smem>>
    %213 = vector.broadcast %212 : f32 to vector<8x128xf32>
    %214 = arith.mulf %213, %207 : vector<8x128xf32>
    %215 = arith.addf %193, %214 : vector<8x128xf32>
    %c0_88 = arith.constant 0 : index
    %c0_89 = arith.constant 0 : index
    %c0_90 = arith.constant 0 : index
    %216 = vector.load %arg4[%c0_88, %c0_89, %c0_90] : memref<2x8x128xf32, #tpu.memory_space<vmem>>, vector<1x8x128xf32>
    %217 = vector.shape_cast %216 : vector<1x8x128xf32> to vector<8x128xf32>
    %218 = vector.shape_cast %211 : vector<8x128xf32> to vector<1x8x128xf32>
    tpu.vector_store %arg4[%c0_88, %c0_89, %c0_90], %218 {strides = array<i32>} : memref<2x8x128xf32, #tpu.memory_space<vmem>>, vector<1x8x128xf32>,
    %c1_91 = arith.constant 1 : index
    %c0_92 = arith.constant 0 : index
    %c0_93 = arith.constant 0 : index
    %219 = vector.load %arg4[%c1_91, %c0_92, %c0_93] : memref<2x8x128xf32, #tpu.memory_space<vmem>>, vector<1x8x128xf32>
    %220 = vector.shape_cast %219 : vector<1x8x128xf32> to vector<8x128xf32>
    %221 = vector.shape_cast %215 : vector<8x128xf32> to vector<1x8x128xf32>
    tpu.vector_store %arg4[%c1_91, %c0_92, %c0_93], %221 {strides = array<i32>} : memref<2x8x128xf32, #tpu.memory_space<vmem>>, vector<1x8x128xf32>,
    return
  }
  func.func @transform_0(%arg0: i32, %arg1: i32) -> (i32, i32) {
    %c0_i32 = arith.constant 0 : i32
    %c0_i32_0 = arith.constant 0 : i32
    %c0_i32_1 = arith.constant 0 : i32
    return %c0_i32, %c0_i32_0 : i32, i32
  }
  func.func @transform_1(%arg0: i32, %arg1: i32) -> (i32, i32) {
    %c0_i32 = arith.constant 0 : i32
    %c0_i32_0 = arith.constant 0 : i32
    %c0_i32_1 = arith.constant 0 : i32
    return %c0_i32, %c0_i32_0 : i32, i32
  }
  func.func @transform_2(%arg0: i32, %arg1: i32) -> (i32, i32, i32) {
    %c0_i32 = arith.constant 0 : i32
    %c0_i32_0 = arith.constant 0 : i32
    return %c0_i32, %arg0, %arg1 : i32, i32, i32
  }
}

</mosaic_0001>

<bundles_post_ra>
// kernel: tpu_custom_call.1
= control target key start
LH: loop header
LB: loop body
LE: loop exit
PB: predicated region body
PF: predicated region fallthrough
CT: control target
= control target key end

     0   :  { %s1191_s0 = inlined_call_operand.hbm [shape: f32[2,8], index: 0, kind: input, shape index: {}]   ;;  %s1192_s1 = inlined_call_operand.hbm [shape: f32[2,11], index: 1, kind: input, shape index: {}]   ;;  %s1193_s2 = inlined_call_operand.hbm [shape: f32[2,16,128], index: 2, kind: output, shape index: {}]  }
   0x1   :  { %1195 = sst [smem:[#allocation11_spill]] %s1191_s0 }
   0x2   :  { %1196 = sst [smem:[#allocation12_spill]] %s1192_s1 }
   0x3   :  { %7 = vsyncpa [#allocation4], 0 }
   0x4   :  { %8 = vsyncpa [#allocation6], 0 }
   0x5   :  { %9 = vsyncpa [#allocation3], 0 }
   0x6   :  { %11 = vsyncpa [#allocation3 + $0x1], 0  ;;  %s865_s9 = smov 0   ;;  %s867_s10 = smov 0  }
   0x7   :  { %s869_s11 = smov 0   ;;  %s871_s12 = smov 0  }
   0x8   :  { %s873_s13 = smov 0   ;;  %s875_s14 = smov 0  }
   0x9 LB: > { %s565_s15 = sadd.s32 4294967295, %s843_s14   ;;  %s566_s16 = sadd.s32 4294967294, %s843_s14   ;;  %s843_s14 = sphi %s875_s14, %s17_s14   ;;  %s839_s13 = sphi %s873_s13, %s1207_s13   ;;  %s835_s12 = sphi %s871_s12, %s1206_s12   ;;  %s831_s11 = sphi %s869_s11, %s1205_s11   ;;  %s827_s10 = sphi %s867_s10, %s1204_s10   ;;  %s823_s9 = sphi %s865_s9, %s1203_s9  }
   0xa   : > { %s29_s17 = sadd.s32 1, %s839_s13  ;;  %s80_s18 = sadd.s32 1, %s831_s11 }
   0xb   : > { %p31_p0 = scmp.ge.s32.totalorder %s29_s17, 2  ;;  %p90_p1 = scmp.ne.s32.totalorder %s831_s11, %s827_s10 }
   0xc   : > { %p91_p2 = scmp.eq.s32.totalorder %s565_s15, 1  ;;  %p96_p3 = scmp.ne.s32.totalorder %s827_s10, %s823_s9 }
   0xd   : > { %s1209_s17 = smov (%p31_p0, %s29_s17), 0  ;;  %p97_p5 = scmp.eq.s32.totalorder %s566_s16, 1 }
   0xe   : > { %p905_p4 = por %p91_p2, %p90_p1  ;;  %s75_s20 = ssub.s32 %s839_s13, %s1209_s17 }
   0xf   : > { %p567_p6 = scmp.ge.s32.totalorder %s843_s14, 1  ;;  %p78_p7 = scmp.eq.s32.totalorder %s75_s20, 0 }
  0x10   : > { %p912_p8 = por %p97_p5, %p96_p3  ;;  %p104_p9 = scmp.lt.s32.totalorder %s843_s14, 3 }
  0x11   : > { %s918_s22 = scalar_select %p78_p7, %s831_s11, %s80_s18  }
  0x12   : > { %p105_p10 = pnand %p567_p6, %p104_p9  ;;  %p920_p11 = scmp.eq.s32.totalorder %s565_s15, 0 }
  0x13   : > { %s1200_s0 = sld [smem:[#allocation11_spill]]  ;;  %s845_s30 = smov [#allocation2]  }
  0x14   : > { %p642_p12 = pneg %p105_p10  ;;  %s1201_s1 = sld [smem:[#allocation12_spill]] }
  0x15   : > { %s846_s3 = smov [#allocation5]  }
  0x16   : > { %p643_p13 = pnand %p920_p11, %p642_p12 }
  0x18   : > { %139 = sbr.rel (%p105_p10) target bundleno = 135 (0x87), region = 28 }
  0x19   : > { %s116_s26 = sshll.u32 %s1200_s0, 4  ;;  %s117_s26 = int_to_ptr.hbm [resolvable:$true] %s116_s26 }
  0x1a   : > { %s126_s29 = sshll.u32 %s1201_s1, 4  ;;  %s127_s29 = int_to_ptr.hbm [resolvable:$true] %s126_s29 }
  0x1b   : > { %645 = dma.hbm_to_smem (!%p643_p13), %s117_s26, 32, %s845_s30, [#allocation4]  }
  0x1c   : > { %648 = dma.hbm_to_smem (!%p643_p13), %s127_s29, 32, %s846_s3, [#allocation6]  }
  0x1d   : > { %810 = dma.done.wait (%p920_p11), [#allocation4], 32  }
  0x1e   : > { %812 = vsyncadd (%p920_p11), [#allocation4], 4294967264 }
  0x1f   : > { %814 = dma.done.wait (%p920_p11), [#allocation6], 32  }
  0x20   : > { %816 = vsyncadd (%p920_p11), [#allocation6], 4294967264 }
  0x21   : > { %151 = sfence }
  0x22   : > { %v167_v0 = vlaneseq  ;;  %s201_s4 = sld [smem:[#allocation2]]  ;;  %s1194_s6 = sshll.u32 %s835_s12, 3 }
  0x23   : > { %s582_s5 = sld [smem:[#allocation2 + $0x80]]  ;;  %s947_s15 = scvt.s32.f32 %s1194_s6 }
  0x24   : > { %v171_v1 = vand.u32 127, %v167_v0  ;;  %s941_s7 = sld [smem:[#allocation5 + $0x8]]  ;;  %v168_v2 = vshrl.u32 %v167_v0, 7 }
  0x25   : > { %s943_s8 = sld [smem:[#allocation5 + $0x9]] }
  0x26   : > { %s949_s16 = sld [smem:[#allocation5 + $0xa]]  ;;  %v951_v3 = vcvt.s32.f32 %v171_v1  ;;  %v958_v5 = vcvt.s32.f32 %v168_v2 }
  0x27   : > { %s953_s18 = sld [smem:[#allocation5 + $0x88]] }
  0x28   : > { %s581_s20 = sadd.f32 -1e-06, %s201_s4 }
  0x29   : > { %s955_s23 = sld [smem:[#allocation5 + $0x89]] }
  0x2a   : > { %s205_s24 = ssub.f32 %s582_s5, %s947_s15  ;;  %v207_v4 = vstv %s581_s20 }
  0x2b   : > { %v208_v6 = vsub.f32 %v951_v3, %v207_v4  ;;  %s585_s25 = sld [smem:[#allocation2 + $0x1]]  ;;  %s175_s30 = smul.f32 0.0, %s943_s8  ;;  %v187_v41 = vstv %s943_s8 }
  0x2c   : > { %s583_s26 = sadd.f32 -1e-06, %s205_s24  ;;  %s178_s1 = smul.f32 %s949_s16, %s947_s15  ;;  %v188_v49 = vmul.f32 %v187_v41, %v951_v3  ;;  %v191_v52 = vstv %s949_s16 }
  0x2d   : > { %s587_s27 = sld [smem:[#allocation2 + $0x81]]  ;;  %v211_v9 = vmul.f32 %v208_v6, %v208_v6  ;;  %v192_v62 = vmul.f32 %v191_v52, %v958_v5 }
  0x2e   : > { %s961_s28 = sld [smem:[#allocation5 + $0x8a]]  ;;  %v209_v7 = vstv %s583_s26 }
  0x2f   : > { %v210_v8 = vsub.f32 %v958_v5, %v209_v7  ;;  %s964_s29 = sld [smem:[#allocation5]]  ;;  %v194_v42 = vstv %s955_s23 }
  0x30   : > { %s591_s3 = sld [smem:[#allocation2 + $0x2]]  ;;  %v195_v53 = vmul.f32 %v194_v42, %v951_v3 }
  0x31   : > { %v212_v10 = vmul.f32 %v210_v8, %v210_v8  ;;  %s586_s4 = sadd.f32 -1e-06, %s585_s25 }
  0x32   : > { %s593_s5 = sld [smem:[#allocation2 + $0x82]] }
  0x33   : > { %v967_v11 = vadd.f32 %v212_v10, %v211_v9  ;;  %s238_s20 = ssub.f32 %s587_s27, %s947_s15  ;;  %v240_v12 = vstv %s586_s4  ;;  %s182_s27 = smul.f32 0.0, %s955_s23 }
  0x34   : > { %s176_s24 = sadd.f32 %s941_s7, %s175_s30  ;;  %v241_v13 = vsub.f32 %v951_v3, %v240_v12  ;;  %v198_v54 = vstv %s961_s28 }
  0x35   : > { %711 = vrsqrt.f32 %v967_v11  ;;  %s588_s26 = sadd.f32 -1e-06, %s238_s20  ;;  %v199_v2 = vmul.f32 %v198_v54, %v958_v5  ;;  %v227_v7 = vstv %s964_s29  ;;  %vm221_vm0 = vcmp.eq.f32.partialorder %v967_v11, inf }
  0x36   : > { %s592_s6 = sadd.f32 -1e-06, %s591_s3  ;;  %v244_v16 = vmul.f32 %v241_v13, %v241_v13  ;;  %vm223_vm1 = vcmp.eq.f32.partialorder %v967_v11, 0.0 }
  0x37   : > { %s973_s0 = sld [smem:[#allocation5 + $0x80]]  ;;  %v242_v14 = vstv %s588_s26 }
  0x38   : > { %v243_v15 = vsub.f32 %v958_v5, %v242_v14  ;;  %s271_s25 = ssub.f32 %s593_s5, %s947_s15  ;;  %v273_v17 = vstv %s592_s6  ;;  %s185_s5 = smul.f32 %s961_s28, %s947_s15 }
  0x39   : > { %v274_v18 = vsub.f32 %v951_v3, %v273_v17  ;;  %s597_s7 = sld [smem:[#allocation2 + $0x3]] }
  0x3a   : > { %v245_v19 = vmul.f32 %v243_v15, %v243_v15  ;;  %s594_s30 = sadd.f32 -1e-06, %s271_s25 }
  0x3b   : > { %v712_v20 = vpop.eup %711  ;;  %s599_s3 = sld [smem:[#allocation2 + $0x83]]  ;;  %v277_v24 = vmul.f32 %v274_v18, %v274_v18  ;;  %v224_v18 = vand.u32 2147483648, %v967_v11 }
  0x3c   : > { %s981_s4 = sadd.f32 %s178_s1, %s176_s24  ;;  %v983_v21 = vadd.f32 %v245_v19, %v244_v16  ;;  %v275_v22 = vstv %s594_s30  ;;  %v215_v25 = vmul.f32 %v712_v20, %v967_v11 }
  0x3d   : > { %s183_s20 = sadd.f32 %s953_s18, %s182_s27  ;;  %v276_v23 = vsub.f32 %v958_v5, %v275_v22  ;;  %v231_v15 = vstv %s973_s0 }
  0x3e   : > { %713 = vrsqrt.f32 %v983_v21  ;;  %s603_s6 = sld [smem:[#allocation2 + $0x4]]  ;;  %v216_v29 = vmul.f32 %v712_v20, %v215_v25  ;;  %v189_v51 = vstv %s981_s4  ;;  %vm254_vm2 = vcmp.eq.f32.partialorder %v983_v21, inf }
  0x3f   : > { %v278_v26 = vmul.f32 %v276_v23, %v276_v23  ;;  %s598_s26 = sadd.f32 -1e-06, %s597_s7  ;;  %v190_v61 = vadd.f32 %v189_v51, %v188_v49  ;;  %vm256_vm3 = vcmp.eq.f32.partialorder %v983_v21, 0.0 }
  0x40   : > { %s605_s25 = sld [smem:[#allocation2 + $0x84]]  ;;  %v217_v34 = vmul.f32 0.5, %v216_v29 }
  0x41   : > { %v991_v27 = vadd.f32 %v278_v26, %v277_v24  ;;  %s304_s1 = ssub.f32 %s599_s3, %s947_s15  ;;  %v306_v28 = vstv %s598_s26  ;;  %v193_v14 = vadd.f32 %v192_v62, %v190_v61 }
  0x42   : > { %s994_s24 = sadd.f32 %s185_s5, %s183_s20  ;;  %v307_v30 = vsub.f32 %v951_v3, %v306_v28  ;;  %v218_v43 = vsub.f32 1.5, %v217_v34 }
  0x43   : > { %715 = vrsqrt.f32 %v991_v27  ;;  %s600_s18 = sadd.f32 -1e-06, %s304_s1  ;;  %vm287_vm4 = vcmp.eq.f32.partialorder %v991_v27, inf  ;;  %v290_v54 = vand.u32 2147483648, %v991_v27  ;;  %vm289_vm5 = vcmp.eq.f32.partialorder %v991_v27, 0.0 }
  0x44   : > { %v714_v31 = vpop.eup %713  ;;  %s604_s27 = sadd.f32 -1e-06, %s603_s6  ;;  %v310_v36 = vmul.f32 %v307_v30, %v307_v30  ;;  %v196_v55 = vstv %s994_s24  ;;  %v219_v56 = vmul.f32 %v712_v20, %v218_v43 }
  0x45   : > { %v248_v32 = vmul.f32 %v714_v31, %v983_v21  ;;  %s999_s7 = sld [smem:[#allocation5 + $0x1]]  ;;  %v308_v33 = vstv %s600_s18  ;;  %v197_v1 = vadd.f32 %v196_v55, %v195_v53 }
  0x46   : > { %v309_v35 = vsub.f32 %v958_v5, %v308_v33  ;;  %s337_s30 = ssub.f32 %s605_s25, %s947_s15  ;;  %v339_v38 = vstv %s604_s27  ;;  %v220_v6 = vmul.f32 %v219_v56, %v967_v11 }
  0x47   : > { %v249_v37 = vmul.f32 %v714_v31, %v248_v32  ;;  %s1003_s3 = sld [smem:[#allocation2 + $0x5]]  ;;  %v340_v46 = vsub.f32 %v951_v3, %v339_v38  ;;  %v200_v17 = vadd.f32 %v199_v2, %v197_v1  ;;  %v257_v38 = vand.u32 2147483648, %v983_v21 }
  0x48   : > { %v311_v39 = vmul.f32 %v309_v35, %v309_v35  ;;  %s606_s20 = sadd.f32 -1e-06, %s337_s30  ;;  %v222_v20 = vsel %vm221_vm0, %v967_v11, %v220_v6 }
  0x49   : > { %v1005_v40 = vpop.eup %715  ;;  %s1009_s5 = sld [smem:[#allocation2 + $0x85]]  ;;  %v250_v47 = vmul.f32 0.5, %v249_v37  ;;  %v343_v58 = vmul.f32 %v340_v46, %v340_v46  ;;  %v225_v33 = vsel %vm223_vm1, %v224_v18, %v222_v20 }
  0x4a   : > { %s1011_s6 = sld [smem:[#allocation5 + $0x81]]  ;;  %v281_v44 = vmul.f32 %v1005_v40, %v991_v27  ;;  %v1015_v45 = vadd.f32 %v311_v39, %v310_v36  ;;  %v341_v48 = vstv %s606_s20 }
  0x4b   : > { %s1018_s26 = sld [smem:[#allocation5 + $0x2]]  ;;  %v342_v57 = vsub.f32 %v958_v5, %v341_v48  ;;  %v251_v59 = vsub.f32 1.5, %v250_v47  ;;  %v260_v26 = vstv %s999_s7 }
  0x4c   : > { %v282_v50 = vmul.f32 %v1005_v40, %v281_v44  ;;  %717 = vrsqrt.f32 %v1015_v45  ;;  %s1023_s8 = sld [smem:[#allocation2 + $0x6]]  ;;  %v228_v44 = vmul.f32 %v227_v7, %v225_v33  ;;  %vm320_vm6 = vcmp.eq.f32.partialorder %v1015_v45, inf }
  0x4d   : > { %s610_s23 = sadd.f32 -1e-06, %s1003_s3  ;;  %v344_v0 = vmul.f32 %v342_v57, %v342_v57  ;;  %v252_v10 = vmul.f32 %v714_v31, %v251_v59  ;;  %v323_v6 = vand.u32 2147483648, %v1015_v45  ;;  %vm322_vm7 = vcmp.eq.f32.partialorder %v1015_v45, 0.0 }
  0x4e   : > { %s1032_s25 = sld [smem:[#allocation2 + $0x86]]  ;;  %v283_v63 = vmul.f32 0.5, %v282_v50  ;;  %v232_v50 = vmul.f32 %v231_v15, %v225_v33  ;;  %v229_v57 = vadd.f32 %v228_v44, %v193_v14 }
  0x4f   : > { %s370_s1 = ssub.f32 %s1009_s5, %s947_s15  ;;  %v372_v60 = vstv %s610_s23  ;;  %v1042_v8 = vadd.f32 %v344_v0, %v343_v58  ;;  %v253_v25 = vmul.f32 %v252_v10, %v983_v21 }
  0x50   : > { %s1037_s16 = sld [smem:[#allocation5 + $0x82]]  ;;  %v373_v9 = vsub.f32 %v951_v3, %v372_v60  ;;  %v284_v16 = vsub.f32 1.5, %v283_v63  ;;  %v264_v39 = vstv %s1011_s6  ;;  %v233_v63 = vadd.f32 %v232_v50, %v200_v17 }
  0x51   : > { %s612_s28 = sadd.f32 -1e-06, %s370_s1  ;;  %719 = vrsqrt.f32 %v1042_v8  ;;  %v293_v41 = vstv %s1018_s26  ;;  %vm353_vm8 = vcmp.eq.f32.partialorder %v1042_v8, inf  ;;  %vm355_vm9 = vcmp.eq.f32.partialorder %v1042_v8, 0.0  ;;  %s160_s1 = sand.u32 1, %s827_s10  }
  0x52   : > { %v718_v4 = vpop.eup %717  ;;  %s616_s4 = sadd.f32 -1e-06, %s1023_s8  ;;  %v376_v23 = vmul.f32 %v373_v9, %v373_v9  ;;  %v285_v30 = vmul.f32 %v1005_v40, %v284_v16  ;;  %v255_v40 = vsel %vm254_vm2, %v983_v21, %v253_v25 }
  0x53   : > { %v314_v12 = vmul.f32 %v718_v4, %v1015_v45  ;;  %s1048_s24 = sld [smem:[#allocation5 + $0x3]]  ;;  %v374_v13 = vstv %s612_s28  ;;  %v258_v51 = vsel %vm256_vm3, %v257_v38, %v255_v40  ;;  %s573_s28 = sshll.u32 %s160_s1, 4 }
  0x54   : > { %s403_s29 = ssub.f32 %s1032_s25, %s947_s15  ;;  %v375_v22 = vsub.f32 %v958_v5, %v374_v13  ;;  %v405_v24 = vstv %s616_s4  ;;  %v286_v46 = vmul.f32 %v285_v30, %v991_v27  ;;  %v261_v60 = vmul.f32 %v260_v26, %v258_v51  ;;  %s1202_s4 = sshll.u32 %s835_s12, 3 }
  0x55   : > { %v315_v19 = vmul.f32 %v718_v4, %v314_v12  ;;  %s1056_s18 = sld [smem:[#allocation2 + $0x7]]  ;;  %v406_v29 = vsub.f32 %v951_v3, %v405_v24  ;;  %v265_v0 = vmul.f32 %v264_v39, %v258_v51  ;;  %s469_s12 = scalar_lea.sflag [#allocation3], %s160_s1 }
  0x56   : > { %s618_s27 = sadd.f32 -1e-06, %s403_s29  ;;  %v377_v31 = vmul.f32 %v375_v22, %v375_v22  ;;  %v297_v52 = vstv %s1037_s16  ;;  %v288_v58 = vsel %vm287_vm4, %v991_v27, %v286_v46  ;;  %v262_v14 = vadd.f32 %v261_v60, %v229_v57 }
  0x57   : > { %v316_v28 = vmul.f32 0.5, %v315_v19  ;;  %s1063_s0 = sld [smem:[#allocation2 + $0x87]]  ;;  %v409_v36 = vmul.f32 %v406_v29, %v406_v29  ;;  %v720_v37 = vpop.eup %719  ;;  %v266_v16 = vadd.f32 %v265_v0, %v233_v63  ;;  %v356_v22 = vand.u32 2147483648, %v1042_v8 }
  0x58   : > { %v407_v32 = vstv %s618_s27  ;;  %v1073_v42 = vadd.f32 %v377_v31, %v376_v23  ;;  %v347_v11 = vmul.f32 %v720_v37, %v1042_v8  ;;  %s1080_s30 = sld [smem:[#allocation5 + $0x83]]  ;;  %s162_s27 = scalar_lea.vmem [#allocation7], %s573_s28 }
  0x59   : > { %v317_v34 = vsub.f32 1.5, %v316_v28  ;;  %v408_v35 = vsub.f32 %v958_v5, %v407_v32  ;;  %v326_v55 = vstv %s1048_s24  ;;  %s1105_s5 = sld [smem:[#allocation5 + $0x84]] }
  0x5a   : > { %721 = vrsqrt.f32 %v1073_v42  ;;  %v348_v48 = vmul.f32 %v720_v37, %v347_v11  ;;  %s1109_s6 = sld [smem:[#allocation5 + $0x5]]  ;;  %vm386_vm10 = vcmp.eq.f32.partialorder %v1073_v42, inf  ;;  %vm388_vm11 = vcmp.eq.f32.partialorder %v1073_v42, 0.0 }
  0x5b   : > { %v410_v43 = vmul.f32 %v408_v35, %v408_v35  ;;  %s622_s7 = sadd.f32 -1e-06, %s1056_s18  ;;  %v318_v47 = vmul.f32 %v718_v4, %v317_v34  ;;  %v291_v4 = vsel %vm289_vm5, %v290_v54, %v288_v58  ;;  %s480_s18 = scalar_lea.hbm %s1193_s2, %s1202_s4 }
  0x5c   : > { %v349_v56 = vmul.f32 0.5, %v348_v48  ;;  %v294_v17 = vmul.f32 %v293_v41, %v291_v4  ;;  %s1117_s26 = sld [smem:[#allocation5 + $0x85]] }
  0x5d   : > { %v1084_v49 = vadd.f32 %v410_v43, %v409_v36  ;;  %s436_s3 = ssub.f32 %s1063_s0, %s947_s15  ;;  %v438_v21 = vstv %s622_s7  ;;  %v319_v59 = vmul.f32 %v318_v47, %v1015_v45  ;;  %s481_s0 = sshll.u32 %s162_s27, 4  ;;  %s482_s0 = int_to_ptr.vmem [resolvable:$true] %s481_s0 }
  0x5e   : > { %v439_v53 = vsub.f32 %v951_v3, %v438_v21  ;;  %v350_v61 = vsub.f32 1.5, %v349_v56  ;;  %s1097_s15 = sld [smem:[#allocation5 + $0x4]]  ;;  %v330_v10 = vstv %s1080_s30  ;;  %v295_v28 = vadd.f32 %v294_v17, %v262_v14  ;;  %s483_s7 = sshll.u32 %s480_s18, 4  ;;  %s484_s7 = int_to_ptr.hbm [resolvable:$true] %s483_s7 }
  0x5f   : > { %723 = vrsqrt.f32 %v1084_v49  ;;  %s624_s20 = sadd.f32 -1e-06, %s436_s3  ;;  %v321_v9 = vsel %vm320_vm6, %v1015_v45, %v319_v59  ;;  %v298_v45 = vmul.f32 %v297_v52, %v291_v4  ;;  %v363_v36 = vstv %s1105_s5  ;;  %s771_s30 = sshra.s32 %s484_s7, 4  ;;  %s772_s30 = int_to_ptr.hbm [resolvable:$true] %s771_s30 }
  0x60   : > { %v722_v62 = vpop.eup %721  ;;  %v442_v2 = vmul.f32 %v439_v53, %v439_v53  ;;  %v351_v27 = vmul.f32 %v720_v37, %v350_v61  ;;  %v324_v20 = vsel %vm322_vm7, %v323_v6, %v321_v9  ;;  %s1121_s8 = sld [smem:[#allocation5 + $0x6]]  ;;  %v392_v39 = vstv %s1109_s6  ;;  %s773_s3 = scalar_lea.hbm %s772_s30, 16 }
  0x61   : > { %v440_v3 = vstv %s624_s20  ;;  %v380_v7 = vmul.f32 %v722_v62, %v1073_v42  ;;  %v327_v29 = vmul.f32 %v326_v55, %v324_v20  ;;  %v299_v32 = vadd.f32 %v298_v45, %v266_v16  ;;  %s1126_s23 = sld [smem:[#allocation5 + $0x86]]  ;;  %p774_p0 = scmp.ne.s32.totalorder %s772_s30, %s773_s3 }
  0x62   : > { %v441_v1 = vsub.f32 %v958_v5, %v440_v3  ;;  %v352_v15 = vmul.f32 %v351_v27, %v1042_v8  ;;  %v331_v33 = vmul.f32 %v330_v10, %v324_v20  ;;  %vm419_vm12 = vcmp.eq.f32.partialorder %v1084_v49, inf  ;;  %s1138_s25 = sld [smem:[#allocation5 + $0x7]]  ;;  %s777_s5 = scalar_lea.hbm %s1193_s2, 32 }
  0x63   : > { %v381_v5 = vmul.f32 %v722_v62, %v380_v7  ;;  %v328_v40 = vadd.f32 %v327_v29, %v295_v28  ;;  %v396_v50 = vstv %s1117_s26  ;;  %v422_v52 = vand.u32 2147483648, %v1084_v49  ;;  %s626_s16 = sld [smem:[#allocation5 + $0x87]]  ;;  %p775_p1 = pnand %p774_p0, %p905_p4 }
  0x64   : > { %v443_v12 = vmul.f32 %v441_v1, %v441_v1  ;;  %v354_v24 = vsel %vm353_vm8, %v1042_v8, %v352_v15  ;;  %v359_v30 = vstv %s1097_s15  ;;  %v389_v8 = vand.u32 2147483648, %v1073_v42  ;;  %p778_p3 = scmp.lt.s32.totalorder %s772_s30, %s1193_s2  ;;  %p779_p5 = scmp.lt.s32.totalorder %s777_s5, %s773_s3 }
  0x65   : > { %v724_v13 = vpop.eup %723  ;;  %v382_v23 = vmul.f32 0.5, %v381_v5  ;;  %v357_v34 = vsel %vm355_vm9, %v356_v22, %v354_v24  ;;  %v332_v44 = vadd.f32 %v331_v33, %v299_v32  ;;  %vm421_vm13 = vcmp.eq.f32.partialorder %v1084_v49, 0.0  ;;  %p776_p2 = pneg %p775_p1 }
  0x66   : > { %v413_v18 = vmul.f32 %v724_v13, %v1084_v49  ;;  %v1112_v19 = vadd.f32 %v443_v12, %v442_v2  ;;  %v360_v11 = vmul.f32 %v359_v30, %v357_v34  ;;  %v364_v46 = vmul.f32 %v363_v36, %v357_v34  ;;  %p780_p6 = por %p779_p5, %p778_p3 }
  0x67   : > { %v383_v26 = vsub.f32 1.5, %v382_v23  ;;  %v425_v60 = vstv %s1121_s8  ;;  %v429_v61 = vstv %s1126_s23 }
  0x68   : > { %v414_v25 = vmul.f32 %v724_v13, %v413_v18  ;;  %725 = vrsqrt.f32 %v1112_v19  ;;  %v361_v54 = vadd.f32 %v360_v11, %v328_v40  ;;  %v365_v56 = vadd.f32 %v364_v46, %v332_v44  ;;  %p781_p7 = pnand %p780_p6, %p776_p2 }
  0x69   : > { %v384_v35 = vmul.f32 %v722_v62, %v383_v26  ;;  %vm452_vm14 = vcmp.eq.f32.partialorder %v1112_v19, inf  ;;  %vm454_vm15 = vcmp.eq.f32.partialorder %v1112_v19, 0.0  ;;  %v458_v6 = vstv %s1138_s25 }
  0x6a   : > { %v415_v31 = vmul.f32 0.5, %v414_v25  ;;  %v462_v27 = vstv %s626_s16 }
  0x6b   : > { %v385_v38 = vmul.f32 %v384_v35, %v1073_v42 }
  0x6c   : > { %v416_v37 = vsub.f32 1.5, %v415_v31 }
  0x6d   : > { %v387_v47 = vsel %vm386_vm10, %v1073_v42, %v385_v38 }
  0x6e   : > { %v726_v41 = vpop.eup %725  ;;  %v417_v43 = vmul.f32 %v724_v13, %v416_v37  ;;  %v390_v21 = vsel %vm388_vm11, %v389_v8, %v387_v47 }
  0x6f   : > { %v446_v48 = vmul.f32 %v726_v41, %v1112_v19  ;;  %v393_v55 = vmul.f32 %v392_v39, %v390_v21  ;;  %v397_v57 = vmul.f32 %v396_v50, %v390_v21 }
  0x70   : > { %v418_v51 = vmul.f32 %v417_v43, %v1084_v49 }
  0x71   : > { %v447_v53 = vmul.f32 %v726_v41, %v446_v48  ;;  %v394_v62 = vadd.f32 %v393_v55, %v361_v54  ;;  %v398_v63 = vadd.f32 %v397_v57, %v365_v56 }
  0x72   : > { %v420_v42 = vsel %vm419_vm12, %v1084_v49, %v418_v51  ;;  %v455_v49 = vand.u32 2147483648, %v1112_v19 }
  0x73   : > { %v448_v58 = vmul.f32 0.5, %v447_v53  ;;  %v423_v59 = vsel %vm421_vm13, %v422_v52, %v420_v42 }
  0x74   : > { %v426_v0 = vmul.f32 %v425_v60, %v423_v59  ;;  %v430_v1 = vmul.f32 %v429_v61, %v423_v59 }
  0x75   : > { %v449_v3 = vsub.f32 1.5, %v448_v58 }
  0x76   : > { %v427_v7 = vadd.f32 %v426_v0, %v394_v62  ;;  %v431_v9 = vadd.f32 %v430_v1, %v398_v63 }
  0x77   : > { %v450_v2 = vmul.f32 %v726_v41, %v449_v3 }
  0x79   : > { %v451_v4 = vmul.f32 %v450_v2, %v1112_v19 }
  0x7b   : > { %v453_v10 = vsel %vm452_vm14, %v1112_v19, %v451_v4 }
  0x7c   : > { %v456_v12 = vsel %vm454_vm15, %v455_v49, %v453_v10 }
  0x7d   : > { %v459_v13 = vmul.f32 %v458_v6, %v456_v12  ;;  %v463_v14 = vmul.f32 %v462_v27, %v456_v12 }
  0x7f   : > { %v460_v15 = vadd.f32 %v459_v13, %v427_v7  ;;  %v464_v5 = vadd.f32 %v463_v14, %v431_v9 }
  0x81   : > { %465 = vst [vmem:[%s162_s27] sm:$0xff] %v460_v15 }
  0x82   : > { %627 = vst [vmem:[%s162_s27 + $0x8] sm:$0xff] %v464_v5 }
  0x83   : > { %784 = shalt.err (!%p781_p7)
}
  0x84   : > { %s847_s8 = smov 128   ;;  %s848_s23 = smov 256  }
  0x85   : > { %s849_s25 = smov 8  }
  0x86   : > { %640 = dma.vmem_to_hbm [thread:$0]  (%p905_p4), %s482_s0, 256, %s484_s7, %s469_s12, %s847_s8, %s848_s23, %s849_s25  }
  0x87 PF: > { %p657_p9 = scmp.ge.s32.totalorder %s843_s14, 2  ;;  %s498_s1 = sand.u32 1, %s823_s9  }
  0x88   : > { %s499_s16 = scalar_lea.sflag [#allocation3], %s498_s1 }
  0x89   : > { %p650_p10 = pnand %p657_p9, %p912_p8 }
  0x8b   : > { %p651_p11 = pneg %p650_p10 }
  0x8d   : > { %818 = dma.done.wait (%p651_p11), %s499_s16, 256  }
  0x8e   : > { %820 = vsyncadd (%p651_p11), %s499_s16, 4294967040  ;;  %s17_s14 = sadd.s32 1, %s843_s14   ;;  %s1203_s9 = smov %s827_s10 }
  0x8f   : > { %p14_p12 = scmp.ge.s32.totalorder %s17_s14, 4   ;;  %s1204_s10 = smov %s831_s11 }
  0x90   : > { %s1205_s11 = smov %s918_s22  ;;  %s1206_s12 = smov %s839_s13 }
  0x91   : > { %s1207_s13 = smov %s1209_s17  ;;  %16 = sbr.rel (!%p14_p12) target bundleno = 9 (0x9), region = 70 }
  0x96   :  { %505 = vsyncpa [#allocation3], 1 }
  0x97   :  { %507 = vsyncpa [#allocation3 + $0x1], 1 }
  0x98   :  { %508 = vsyncpa [#allocation4], 1 }
  0x99   :  { %510 = vsyncpa [#allocation4 + $0x1], 1 }
  0x9a   :  { %511 = vsyncpa [#allocation6], 1 }

</bundles_post_ra>
